<compile_context>
chip_gen: v7x
topology: tpu7x:2x2x1
jax: 0.10.0
libtpu: 0.0.40
codegen_flags: <defaults>
</compile_context>

<pallas_src>
import functools
import math

import jax
import jax.numpy as jnp
from jax.experimental import pallas as pl
from jax.experimental.pallas import tpu as pltpu


_NEG_INF = -1e30  # large finite negative: robust masking (avoids inf-inf NaNs)


# ---------------------------------------------------------------------------
# In-kernel helpers
# ---------------------------------------------------------------------------
def _layernorm(v, w, b, eps=1e-5):
    mu = jnp.mean(v, axis=-1, keepdims=True)
    var = jnp.mean(jnp.square(v - mu), axis=-1, keepdims=True)
    return (v - mu) * jax.lax.rsqrt(var + eps) * w + b


def _erf(x):
    # Abramowitz & Stegun 7.1.26 polynomial approximation, |error| < 1.5e-7.
    a1, a2, a3, a4, a5 = (0.254829592, -0.284496736, 1.421413741,
                          -1.453152027, 1.061405429)
    p = 0.3275911
    ax = jnp.abs(x)
    t = 1.0 / (1.0 + p * ax)
    poly = ((((a5 * t + a4) * t + a3) * t + a2) * t + a1) * t
    y = 1.0 - poly * jnp.exp(-ax * ax)
    return jnp.where(x >= 0.0, y, -y)


def _gelu_exact(x):
    # Matches PyTorch nn.GELU() default (erf form) to f32 precision.
    return 0.5 * x * (1.0 + _erf(x * (1.0 / math.sqrt(2.0))))


# ---------------------------------------------------------------------------
# Fused transformer-block kernel (one batch element per grid step)
# ---------------------------------------------------------------------------
def _block_kernel(x_ref, ln1w, ln1b, wqkv, bqkv, wo, bo,
                  ln2w, ln2b, w1, b1, w2, b2, o_ref, *, num_heads):
    x = x_ref[0]                                   # [T, C]
    T, C = x.shape
    H = num_heads
    dh = C // H
    scale = 1.0 / math.sqrt(dh)

    # Causal mask, built once per grid step.
    row = jax.lax.broadcasted_iota(jnp.int32, (T, T), 0)
    col = jax.lax.broadcasted_iota(jnp.int32, (T, T), 1)
    causal = row >= col                            # [T, T]

    # --- causal self-attention branch ---
    h = _layernorm(x, ln1w[...], ln1b[...])
    qkv = jnp.dot(h, wqkv[...], preferred_element_type=jnp.float32) + bqkv[...]
    q = qkv[:, 0 * C:1 * C].reshape(T, H, dh)      # [T, H, dh]
    k = qkv[:, 1 * C:2 * C].reshape(T, H, dh)
    v = qkv[:, 2 * C:3 * C].reshape(T, H, dh)

    # All heads in a single batched contraction (no Python head loop / concat).
    att = jnp.einsum('thd,shd->hts', q, k,
                     preferred_element_type=jnp.float32) * scale   # [H, T, T]
    att = jnp.where(causal[None, :, :], att, _NEG_INF)
    att = att - jnp.max(att, axis=-1, keepdims=True)
    p = jnp.exp(att)
    p = p * pl.reciprocal(jnp.sum(p, axis=-1, keepdims=True), approx=True)

    y = jnp.einsum('hts,shd->thd', p, v,
                   preferred_element_type=jnp.float32).reshape(T, C)
    y = jnp.dot(y, wo[...], preferred_element_type=jnp.float32) + bo[...]
    x = x + y                                      # residual

    # --- MLP branch ---
    h2 = _layernorm(x, ln2w[...], ln2b[...])
    m = jnp.dot(h2, w1[...], preferred_element_type=jnp.float32) + b1[...]
    m = _gelu_exact(m)
    m = jnp.dot(m, w2[...], preferred_element_type=jnp.float32) + b2[...]

    o_ref[0] = x + m                               # residual


# ---------------------------------------------------------------------------
# pallas_call wrapper
# ---------------------------------------------------------------------------
def _param_spec(a):
    n = a.ndim
    return pl.BlockSpec(a.shape, lambda b, _n=n: (0,) * _n)


def block_forward(x, p, *, num_heads):
    B, T, C = x.shape
    param_order = [p['ln1_w'], p['ln1_b'], p['wqkv'], p['bqkv'], p['wo'], p['bo'],
                   p['ln2_w'], p['ln2_b'], p['w1'], p['b1'], p['w2'], p['b2']]
    in_specs = [pl.BlockSpec((1, T, C), lambda b: (b, 0, 0))]
    in_specs += [_param_spec(a) for a in param_order]
    return pl.pallas_call(
        functools.partial(_block_kernel, num_heads=num_heads),
        out_shape=jax.ShapeDtypeStruct((B, T, C), jnp.float32),
        grid=(B,),
        in_specs=in_specs,
        out_specs=pl.BlockSpec((1, T, C), lambda b: (b, 0, 0)),
        compiler_params=pltpu.CompilerParams(dimension_semantics=("parallel",)),
    )(x, *param_order)


# ---------------------------------------------------------------------------
# Deterministic parameter init (Linear weights ~ N(0, 0.02) stored as
# [in, out], biases zero, LayerNorm weight=1 / bias=0).  Q/K/V weights are
# pre-fused into a single [C, 3C] matrix (query | key | value columns).
# ---------------------------------------------------------------------------
def init_block_params(key, C):
    def normal(k, shape):
        return 0.02 * jax.random.normal(k, shape, jnp.float32)

    kq, kk, kv, ko, k1, k2 = jax.random.split(key, 6)
    wqkv = jnp.concatenate(
        [normal(kq, (C, C)), normal(kk, (C, C)), normal(kv, (C, C))], axis=1)
    return dict(
        ln1_w=jnp.ones((1, C), jnp.float32), ln1_b=jnp.zeros((1, C), jnp.float32),
        wqkv=wqkv, bqkv=jnp.zeros((1, 3 * C), jnp.float32),
        wo=normal(ko, (C, C)), bo=jnp.zeros((1, C), jnp.float32),
        ln2_w=jnp.ones((1, C), jnp.float32), ln2_b=jnp.zeros((1, C), jnp.float32),
        w1=normal(k1, (C, 4 * C)), b1=jnp.zeros((1, 4 * C), jnp.float32),
        w2=normal(k2, (4 * C, C)), b2=jnp.zeros((1, C), jnp.float32),
    )


if __name__ == "__main__":
    # Shapes implied by the module: dim_hidden=32, num_heads=4, T <= length_eq.
    B, T, C, H = 2, 8, 32, 4
    key = jax.random.PRNGKey(0)
    pkey, xkey = jax.random.split(key)
    params = init_block_params(pkey, C)
    x = jax.random.normal(xkey, (B, T, C), jnp.float32)

    fwd = jax.jit(functools.partial(block_forward, num_heads=H))
    out = jax.block_until_ready(fwd(x, params))

    assert out.shape == (B, T, C)
    assert bool(jnp.all(jnp.isfinite(out)))
    print("KERNEL_OK")
</pallas_src>

<mosaic_0001>
module attributes {stable_mosaic.version = 11 : i64} {
  func.func @_block_kernel(%arg0: i32, %arg1: memref<1x8x32xf32, #tpu.memory_space<vmem>>, %arg2: memref<1x32xf32, #tpu.memory_space<vmem>>, %arg3: memref<1x32xf32, #tpu.memory_space<vmem>>, %arg4: memref<32x96xf32, #tpu.memory_space<vmem>>, %arg5: memref<1x96xf32, #tpu.memory_space<vmem>>, %arg6: memref<32x32xf32, #tpu.memory_space<vmem>>, %arg7: memref<1x32xf32, #tpu.memory_space<vmem>>, %arg8: memref<1x32xf32, #tpu.memory_space<vmem>>, %arg9: memref<1x32xf32, #tpu.memory_space<vmem>>, %arg10: memref<32x128xf32, #tpu.memory_space<vmem>>, %arg11: memref<1x128xf32, #tpu.memory_space<vmem>>, %arg12: memref<128x32xf32, #tpu.memory_space<vmem>>, %arg13: memref<1x32xf32, #tpu.memory_space<vmem>>, %arg14: memref<1x8x32xf32, #tpu.memory_space<vmem>>) attributes {dimension_semantics = [#tpu.dimension_semantics<parallel>], iteration_bounds = array<i64: 2>, scalar_prefetch = 0 : i64, scratch_operands = 0 : i64, tpu.core_type = #tpu.core_type<tc>, window_params = [{transform_indices = @transform_0, window_bounds = array<i64: 1, 8, 32>}, {pipeline_mode = #tpu.pipeline_mode<synchronous>, transform_indices = @transform_1, window_bounds = array<i64: 1, 32>}, {pipeline_mode = #tpu.pipeline_mode<synchronous>, transform_indices = @transform_2, window_bounds = array<i64: 1, 32>}, {pipeline_mode = #tpu.pipeline_mode<synchronous>, transform_indices = @transform_3, window_bounds = array<i64: 32, 96>}, {pipeline_mode = #tpu.pipeline_mode<synchronous>, transform_indices = @transform_4, window_bounds = array<i64: 1, 96>}, {pipeline_mode = #tpu.pipeline_mode<synchronous>, transform_indices = @transform_5, window_bounds = array<i64: 32, 32>}, {pipeline_mode = #tpu.pipeline_mode<synchronous>, transform_indices = @transform_6, window_bounds = array<i64: 1, 32>}, {pipeline_mode = #tpu.pipeline_mode<synchronous>, transform_indices = @transform_7, window_bounds = array<i64: 1, 32>}, {pipeline_mode = #tpu.pipeline_mode<synchronous>, transform_indices = @transform_8, window_bounds = array<i64: 1, 32>}, {pipeline_mode = #tpu.pipeline_mode<synchronous>, transform_indices = @transform_9, window_bounds = array<i64: 32, 128>}, {pipeline_mode = #tpu.pipeline_mode<synchronous>, transform_indices = @transform_10, window_bounds = array<i64: 1, 128>}, {pipeline_mode = #tpu.pipeline_mode<synchronous>, transform_indices = @transform_11, window_bounds = array<i64: 128, 32>}, {pipeline_mode = #tpu.pipeline_mode<synchronous>, transform_indices = @transform_12, window_bounds = array<i64: 1, 32>}, {transform_indices = @transform_13, window_bounds = array<i64: 1, 8, 32>}]} {
    %c0 = arith.constant 0 : index
    %c0_0 = arith.constant 0 : index
    %c0_1 = arith.constant 0 : index
    %0 = vector.load %arg1[%c0, %c0_0, %c0_1] : memref<1x8x32xf32, #tpu.memory_space<vmem>>, vector<1x8x32xf32>
    %1 = vector.shape_cast %0 : vector<1x8x32xf32> to vector<8x32xf32>
    %2 = tpu.iota {dimensions = array<i32: 0>} : vector<8x8xi32>
    %3 = tpu.iota {dimensions = array<i32: 1>} : vector<8x8xi32>
    %4 = arith.cmpi sge, %2, %3 : vector<8x8xi32>
    %c0_2 = arith.constant 0 : index
    %c0_3 = arith.constant 0 : index
    %5 = vector.load %arg2[%c0_2, %c0_3] : memref<1x32xf32, #tpu.memory_space<vmem>>, vector<1x32xf32>
    %c0_4 = arith.constant 0 : index
    %c0_5 = arith.constant 0 : index
    %6 = vector.load %arg3[%c0_4, %c0_5] : memref<1x32xf32, #tpu.memory_space<vmem>>, vector<1x32xf32>
    %cst = arith.constant dense<0.000000e+00> : vector<8xf32>
    %7 = vector.multi_reduction <add>, %1, %cst [1] : vector<8x32xf32> to vector<8xf32>
    %8 = vector.shape_cast %7 : vector<8xf32> to vector<8x1xf32>
    %cst_6 = arith.constant 3.200000e+01 : f32
    %9 = vector.broadcast %cst_6 : f32 to vector<8x1xf32>
    %10 = arith.divf %8, %9 : vector<8x1xf32>
    %11 = vector.broadcast %10 : vector<8x1xf32> to vector<8x32xf32>
    %12 = arith.subf %1, %11 : vector<8x32xf32>
    %13 = arith.mulf %12, %12 : vector<8x32xf32>
    %cst_7 = arith.constant dense<0.000000e+00> : vector<8xf32>
    %14 = vector.multi_reduction <add>, %13, %cst_7 [1] : vector<8x32xf32> to vector<8xf32>
    %15 = vector.shape_cast %14 : vector<8xf32> to vector<8x1xf32>
    %cst_8 = arith.constant 3.200000e+01 : f32
    %16 = vector.broadcast %cst_8 : f32 to vector<8x1xf32>
    %17 = arith.divf %15, %16 : vector<8x1xf32>
    %18 = vector.broadcast %10 : vector<8x1xf32> to vector<8x32xf32>
    %19 = arith.subf %1, %18 : vector<8x32xf32>
    %cst_9 = arith.constant 9.99999974E-6 : f32
    %20 = vector.broadcast %cst_9 : f32 to vector<8x1xf32>
    %21 = arith.addf %17, %20 : vector<8x1xf32>
    %22 = math.rsqrt %21 : vector<8x1xf32>
    %23 = vector.broadcast %22 : vector<8x1xf32> to vector<8x32xf32>
    %24 = arith.mulf %19, %23 : vector<8x32xf32>
    %25 = vector.broadcast %5 : vector<1x32xf32> to vector<8x32xf32>
    %26 = arith.mulf %24, %25 : vector<8x32xf32>
    %27 = vector.broadcast %6 : vector<1x32xf32> to vector<8x32xf32>
    %28 = arith.addf %26, %27 : vector<8x32xf32>
    %c0_10 = arith.constant 0 : index
    %c0_11 = arith.constant 0 : index
    %29 = vector.load %arg4[%c0_10, %c0_11] : memref<32x96xf32, #tpu.memory_space<vmem>>, vector<32x96xf32>
    %cst_12 = arith.constant dense<0.000000e+00> : vector<8x96xf32>
    %30 = tpu.matmul %28, %29, %cst_12 {dimension_numbers = #tpu.dot_dimension_numbers<[1], [0], [0], [1], [0, 0, 1, 1], [], []>} : vector<8x32xf32>, vector<32x96xf32>, vector<8x96xf32> -> vector<8x96xf32>
    %c0_13 = arith.constant 0 : index
    %c0_14 = arith.constant 0 : index
    %31 = vector.load %arg5[%c0_13, %c0_14] : memref<1x96xf32, #tpu.memory_space<vmem>>, vector<1x96xf32>
    %32 = vector.broadcast %31 : vector<1x96xf32> to vector<8x96xf32>
    %33 = arith.addf %30, %32 : vector<8x96xf32>
    %34 = vector.extract_strided_slice %33 {offsets = [0, 0], sizes = [8, 32], strides = [1, 1]} : vector<8x96xf32> to vector<8x32xf32>
    %35 = vector.shape_cast %34 : vector<8x32xf32> to vector<8x4x8xf32>
    %36 = vector.extract_strided_slice %33 {offsets = [0, 32], sizes = [8, 32], strides = [1, 1]} : vector<8x96xf32> to vector<8x32xf32>
    %37 = vector.shape_cast %36 : vector<8x32xf32> to vector<8x4x8xf32>
    %38 = vector.extract_strided_slice %33 {offsets = [0, 64], sizes = [8, 32], strides = [1, 1]} : vector<8x96xf32> to vector<8x32xf32>
    %39 = vector.shape_cast %38 : vector<8x32xf32> to vector<8x4x8xf32>
    "tpu.trace_start"() <{level = 10 : i32, message = "thd,shd->hts"}> : () -> ()
    %cst_15 = arith.constant dense<0.000000e+00> : vector<4x8x8xf32>
    %40 = tpu.matmul %35, %37, %cst_15 {dimension_numbers = #tpu.dot_dimension_numbers<[2], [2], [0], [0], [0, 1, 0, 0, 1, 0], [1], [1]>} : vector<8x4x8xf32>, vector<8x4x8xf32>, vector<4x8x8xf32> -> vector<4x8x8xf32>
    "tpu.trace_stop"() : () -> ()
    %cst_16 = arith.constant 0.353553385 : f32
    %41 = vector.broadcast %cst_16 : f32 to vector<4x8x8xf32>
    %42 = arith.mulf %40, %41 : vector<4x8x8xf32>
    %43 = vector.shape_cast %4 : vector<8x8xi1> to vector<1x8x8xi1>
    %cst_17 = arith.constant -1.000000e+30 : f32
    %44 = vector.shape_cast %43 : vector<1x8x8xi1> to vector<1x8x8xi1>
    %45 = vector.broadcast %44 : vector<1x8x8xi1> to vector<4x8x8xi1>
    %46 = vector.broadcast %cst_17 : f32 to vector<4x8x8xf32>
    %47 = arith.select %45, %42, %46 : vector<4x8x8xi1>, vector<4x8x8xf32>
    %cst_18 = arith.constant dense<0xFF800000> : vector<4x8xf32>
    %48 = vector.multi_reduction <maximumf>, %47, %cst_18 [2] : vector<4x8x8xf32> to vector<4x8xf32>
    %49 = vector.shape_cast %48 : vector<4x8xf32> to vector<4x8x1xf32>
    %50 = vector.broadcast %49 : vector<4x8x1xf32> to vector<4x8x8xf32>
    %51 = arith.subf %47, %50 : vector<4x8x8xf32>
    %52 = math.exp %51 : vector<4x8x8xf32>
    %cst_19 = arith.constant dense<0.000000e+00> : vector<4x8xf32>
    %53 = vector.multi_reduction <add>, %52, %cst_19 [2] : vector<4x8x8xf32> to vector<4x8xf32>
    %54 = vector.shape_cast %53 : vector<4x8xf32> to vector<4x8x1xf32>
    %55 = tpu.reciprocal %54 {approx = true} : vector<4x8x1xf32> -> vector<4x8x1xf32>
    %56 = vector.broadcast %55 : vector<4x8x1xf32> to vector<4x8x8xf32>
    %57 = arith.mulf %52, %56 : vector<4x8x8xf32>
    "tpu.trace_start"() <{level = 10 : i32, message = "hts,shd->thd"}> : () -> ()
    %cst_20 = arith.constant dense<0.000000e+00> : vector<4x8x8xf32>
    %58 = tpu.matmul %39, %57, %cst_20 {dimension_numbers = #tpu.dot_dimension_numbers<[0], [2], [2], [1], [0, 1, 0, 2, 1, 1], [1], [0]>} : vector<8x4x8xf32>, vector<4x8x8xf32>, vector<4x8x8xf32> -> vector<4x8x8xf32>
    %59 = tpu.transpose %58, [2, 0, 1] : vector<4x8x8xf32> -> vector<8x4x8xf32>
    "tpu.trace_stop"() : () -> ()
    %60 = vector.shape_cast %59 : vector<8x4x8xf32> to vector<8x32xf32>
    %c0_21 = arith.constant 0 : index
    %c0_22 = arith.constant 0 : index
    %61 = vector.load %arg6[%c0_21, %c0_22] : memref<32x32xf32, #tpu.memory_space<vmem>>, vector<32x32xf32>
    %cst_23 = arith.constant dense<0.000000e+00> : vector<8x32xf32>
    %62 = tpu.matmul %60, %61, %cst_23 {dimension_numbers = #tpu.dot_dimension_numbers<[1], [0], [0], [1], [0, 0, 1, 1], [], []>} : vector<8x32xf32>, vector<32x32xf32>, vector<8x32xf32> -> vector<8x32xf32>
    %c0_24 = arith.constant 0 : index
    %c0_25 = arith.constant 0 : index
    %63 = vector.load %arg7[%c0_24, %c0_25] : memref<1x32xf32, #tpu.memory_space<vmem>>, vector<1x32xf32>
    %64 = vector.broadcast %63 : vector<1x32xf32> to vector<8x32xf32>
    %65 = arith.addf %62, %64 : vector<8x32xf32>
    %66 = arith.addf %1, %65 : vector<8x32xf32>
    %c0_26 = arith.constant 0 : index
    %c0_27 = arith.constant 0 : index
    %67 = vector.load %arg8[%c0_26, %c0_27] : memref<1x32xf32, #tpu.memory_space<vmem>>, vector<1x32xf32>
    %c0_28 = arith.constant 0 : index
    %c0_29 = arith.constant 0 : index
    %68 = vector.load %arg9[%c0_28, %c0_29] : memref<1x32xf32, #tpu.memory_space<vmem>>, vector<1x32xf32>
    %cst_30 = arith.constant dense<0.000000e+00> : vector<8xf32>
    %69 = vector.multi_reduction <add>, %66, %cst_30 [1] : vector<8x32xf32> to vector<8xf32>
    %70 = vector.shape_cast %69 : vector<8xf32> to vector<8x1xf32>
    %cst_31 = arith.constant 3.200000e+01 : f32
    %71 = vector.broadcast %cst_31 : f32 to vector<8x1xf32>
    %72 = arith.divf %70, %71 : vector<8x1xf32>
    %73 = vector.broadcast %72 : vector<8x1xf32> to vector<8x32xf32>
    %74 = arith.subf %66, %73 : vector<8x32xf32>
    %75 = arith.mulf %74, %74 : vector<8x32xf32>
    %cst_32 = arith.constant dense<0.000000e+00> : vector<8xf32>
    %76 = vector.multi_reduction <add>, %75, %cst_32 [1] : vector<8x32xf32> to vector<8xf32>
    %77 = vector.shape_cast %76 : vector<8xf32> to vector<8x1xf32>
    %cst_33 = arith.constant 3.200000e+01 : f32
    %78 = vector.broadcast %cst_33 : f32 to vector<8x1xf32>
    %79 = arith.divf %77, %78 : vector<8x1xf32>
    %80 = vector.broadcast %72 : vector<8x1xf32> to vector<8x32xf32>
    %81 = arith.subf %66, %80 : vector<8x32xf32>
    %cst_34 = arith.constant 9.99999974E-6 : f32
    %82 = vector.broadcast %cst_34 : f32 to vector<8x1xf32>
    %83 = arith.addf %79, %82 : vector<8x1xf32>
    %84 = math.rsqrt %83 : vector<8x1xf32>
    %85 = vector.broadcast %84 : vector<8x1xf32> to vector<8x32xf32>
    %86 = arith.mulf %81, %85 : vector<8x32xf32>
    %87 = vector.broadcast %67 : vector<1x32xf32> to vector<8x32xf32>
    %88 = arith.mulf %86, %87 : vector<8x32xf32>
    %89 = vector.broadcast %68 : vector<1x32xf32> to vector<8x32xf32>
    %90 = arith.addf %88, %89 : vector<8x32xf32>
    %c0_35 = arith.constant 0 : index
    %c0_36 = arith.constant 0 : index
    %91 = vector.load %arg10[%c0_35, %c0_36] : memref<32x128xf32, #tpu.memory_space<vmem>>, vector<32x128xf32>
    %cst_37 = arith.constant dense<0.000000e+00> : vector<8x128xf32>
    %92 = tpu.matmul %90, %91, %cst_37 {dimension_numbers = #tpu.dot_dimension_numbers<[1], [0], [0], [1], [0, 0, 1, 1], [], []>} : vector<8x32xf32>, vector<32x128xf32>, vector<8x128xf32> -> vector<8x128xf32>
    %c0_38 = arith.constant 0 : index
    %c0_39 = arith.constant 0 : index
    %93 = vector.load %arg11[%c0_38, %c0_39] : memref<1x128xf32, #tpu.memory_space<vmem>>, vector<1x128xf32>
    %94 = vector.broadcast %93 : vector<1x128xf32> to vector<8x128xf32>
    %95 = arith.addf %92, %94 : vector<8x128xf32>
    %cst_40 = arith.constant 5.000000e-01 : f32
    %96 = vector.broadcast %cst_40 : f32 to vector<8x128xf32>
    %97 = arith.mulf %96, %95 : vector<8x128xf32>
    %cst_41 = arith.constant 0.707106769 : f32
    %98 = vector.broadcast %cst_41 : f32 to vector<8x128xf32>
    %99 = arith.mulf %95, %98 : vector<8x128xf32>
    %100 = math.absf %99 : vector<8x128xf32>
    %cst_42 = arith.constant 0.327591091 : f32
    %101 = vector.broadcast %cst_42 : f32 to vector<8x128xf32>
    %102 = arith.mulf %101, %100 : vector<8x128xf32>
    %cst_43 = arith.constant 1.000000e+00 : f32
    %103 = vector.broadcast %cst_43 : f32 to vector<8x128xf32>
    %104 = arith.addf %103, %102 : vector<8x128xf32>
    %cst_44 = arith.constant 1.000000e+00 : f32
    %105 = vector.broadcast %cst_44 : f32 to vector<8x128xf32>
    %106 = arith.divf %105, %104 : vector<8x128xf32>
    %cst_45 = arith.constant 1.06140542 : f32
    %107 = vector.broadcast %cst_45 : f32 to vector<8x128xf32>
    %108 = arith.mulf %107, %106 : vector<8x128xf32>
    %cst_46 = arith.constant -1.45315206 : f32
    %109 = vector.broadcast %cst_46 : f32 to vector<8x128xf32>
    %110 = arith.addf %108, %109 : vector<8x128xf32>
    %111 = arith.mulf %110, %106 : vector<8x128xf32>
    %cst_47 = arith.constant 1.42141378 : f32
    %112 = vector.broadcast %cst_47 : f32 to vector<8x128xf32>
    %113 = arith.addf %111, %112 : vector<8x128xf32>
    %114 = arith.mulf %113, %106 : vector<8x128xf32>
    %cst_48 = arith.constant -0.284496725 : f32
    %115 = vector.broadcast %cst_48 : f32 to vector<8x128xf32>
    %116 = arith.addf %114, %115 : vector<8x128xf32>
    %117 = arith.mulf %116, %106 : vector<8x128xf32>
    %cst_49 = arith.constant 0.254829586 : f32
    %118 = vector.broadcast %cst_49 : f32 to vector<8x128xf32>
    %119 = arith.addf %117, %118 : vector<8x128xf32>
    %120 = arith.mulf %119, %106 : vector<8x128xf32>
    %cst_50 = arith.constant 0.000000e+00 : f32
    %121 = vector.broadcast %cst_50 : f32 to vector<8x128xf32>
    %122 = arith.subf %121, %100 : vector<8x128xf32>
    %123 = arith.mulf %122, %100 : vector<8x128xf32>
    %124 = math.exp %123 : vector<8x128xf32>
    %125 = arith.mulf %120, %124 : vector<8x128xf32>
    %cst_51 = arith.constant 1.000000e+00 : f32
    %126 = vector.broadcast %cst_51 : f32 to vector<8x128xf32>
    %127 = arith.subf %126, %125 : vector<8x128xf32>
    %cst_52 = arith.constant 0.000000e+00 : f32
    %128 = vector.broadcast %cst_52 : f32 to vector<8x128xf32>
    %129 = arith.cmpf oge, %99, %128 : vector<8x128xf32>
    %cst_53 = arith.constant 0.000000e+00 : f32
    %130 = vector.broadcast %cst_53 : f32 to vector<8x128xf32>
    %131 = arith.subf %130, %127 : vector<8x128xf32>
    %132 = arith.select %129, %127, %131 : vector<8x128xi1>, vector<8x128xf32>
    %cst_54 = arith.constant 1.000000e+00 : f32
    %133 = vector.broadcast %cst_54 : f32 to vector<8x128xf32>
    %134 = arith.addf %133, %132 : vector<8x128xf32>
    %135 = arith.mulf %97, %134 : vector<8x128xf32>
    %c0_55 = arith.constant 0 : index
    %c0_56 = arith.constant 0 : index
    %136 = vector.load %arg12[%c0_55, %c0_56] : memref<128x32xf32, #tpu.memory_space<vmem>>, vector<128x32xf32>
    %cst_57 = arith.constant dense<0.000000e+00> : vector<8x32xf32>
    %137 = tpu.matmul %135, %136, %cst_57 {dimension_numbers = #tpu.dot_dimension_numbers<[1], [0], [0], [1], [0, 0, 1, 1], [], []>} : vector<8x128xf32>, vector<128x32xf32>, vector<8x32xf32> -> vector<8x32xf32>
    %c0_58 = arith.constant 0 : index
    %c0_59 = arith.constant 0 : index
    %138 = vector.load %arg13[%c0_58, %c0_59] : memref<1x32xf32, #tpu.memory_space<vmem>>, vector<1x32xf32>
    %139 = vector.broadcast %138 : vector<1x32xf32> to vector<8x32xf32>
    %140 = arith.addf %137, %139 : vector<8x32xf32>
    %141 = arith.addf %66, %140 : vector<8x32xf32>
    %c0_60 = arith.constant 0 : index
    %c0_61 = arith.constant 0 : index
    %c0_62 = arith.constant 0 : index
    %142 = vector.load %arg14[%c0_60, %c0_61, %c0_62] : memref<1x8x32xf32, #tpu.memory_space<vmem>>, vector<1x8x32xf32>
    %143 = vector.shape_cast %142 : vector<1x8x32xf32> to vector<8x32xf32>
    %144 = vector.shape_cast %141 : vector<8x32xf32> to vector<1x8x32xf32>
    tpu.vector_store %arg14[%c0_60, %c0_61, %c0_62], %144 {strides = array<i32>} : memref<1x8x32xf32, #tpu.memory_space<vmem>>, vector<1x8x32xf32>,
    return
  }
  func.func @transform_0(%arg0: i32) -> (i32, i32, i32) {
    %c0_i32 = arith.constant 0 : i32
    %c0_i32_0 = arith.constant 0 : i32
    %c0_i32_1 = arith.constant 0 : i32
    return %arg0, %c0_i32, %c0_i32_0 : i32, i32, i32
  }
  func.func @transform_1(%arg0: i32) -> (i32, i32) {
    %c0_i32 = arith.constant 0 : i32
    %c0_i32_0 = arith.constant 0 : i32
    %c0_i32_1 = arith.constant 0 : i32
    return %c0_i32, %c0_i32_0 : i32, i32
  }
  func.func @transform_2(%arg0: i32) -> (i32, i32) {
    %c0_i32 = arith.constant 0 : i32
    %c0_i32_0 = arith.constant 0 : i32
    %c0_i32_1 = arith.constant 0 : i32
    return %c0_i32, %c0_i32_0 : i32, i32
  }
  func.func @transform_3(%arg0: i32) -> (i32, i32) {
    %c0_i32 = arith.constant 0 : i32
    %c0_i32_0 = arith.constant 0 : i32
    %c0_i32_1 = arith.constant 0 : i32
    return %c0_i32, %c0_i32_0 : i32, i32
  }
  func.func @transform_4(%arg0: i32) -> (i32, i32) {
    %c0_i32 = arith.constant 0 : i32
    %c0_i32_0 = arith.constant 0 : i32
    %c0_i32_1 = arith.constant 0 : i32
    return %c0_i32, %c0_i32_0 : i32, i32
  }
  func.func @transform_5(%arg0: i32) -> (i32, i32) {
    %c0_i32 = arith.constant 0 : i32
    %c0_i32_0 = arith.constant 0 : i32
    %c0_i32_1 = arith.constant 0 : i32
    return %c0_i32, %c0_i32_0 : i32, i32
  }
  func.func @transform_6(%arg0: i32) -> (i32, i32) {
    %c0_i32 = arith.constant 0 : i32
    %c0_i32_0 = arith.constant 0 : i32
    %c0_i32_1 = arith.constant 0 : i32
    return %c0_i32, %c0_i32_0 : i32, i32
  }
  func.func @transform_7(%arg0: i32) -> (i32, i32) {
    %c0_i32 = arith.constant 0 : i32
    %c0_i32_0 = arith.constant 0 : i32
    %c0_i32_1 = arith.constant 0 : i32
    return %c0_i32, %c0_i32_0 : i32, i32
  }
  func.func @transform_8(%arg0: i32) -> (i32, i32) {
    %c0_i32 = arith.constant 0 : i32
    %c0_i32_0 = arith.constant 0 : i32
    %c0_i32_1 = arith.constant 0 : i32
    return %c0_i32, %c0_i32_0 : i32, i32
  }
  func.func @transform_9(%arg0: i32) -> (i32, i32) {
    %c0_i32 = arith.constant 0 : i32
    %c0_i32_0 = arith.constant 0 : i32
    %c0_i32_1 = arith.constant 0 : i32
    return %c0_i32, %c0_i32_0 : i32, i32
  }
  func.func @transform_10(%arg0: i32) -> (i32, i32) {
    %c0_i32 = arith.constant 0 : i32
    %c0_i32_0 = arith.constant 0 : i32
    %c0_i32_1 = arith.constant 0 : i32
    return %c0_i32, %c0_i32_0 : i32, i32
  }
  func.func @transform_11(%arg0: i32) -> (i32, i32) {
    %c0_i32 = arith.constant 0 : i32
    %c0_i32_0 = arith.constant 0 : i32
    %c0_i32_1 = arith.constant 0 : i32
    return %c0_i32, %c0_i32_0 : i32, i32
  }
  func.func @transform_12(%arg0: i32) -> (i32, i32) {
    %c0_i32 = arith.constant 0 : i32
    %c0_i32_0 = arith.constant 0 : i32
    %c0_i32_1 = arith.constant 0 : i32
    return %c0_i32, %c0_i32_0 : i32, i32
  }
  func.func @transform_13(%arg0: i32) -> (i32, i32, i32) {
    %c0_i32 = arith.constant 0 : i32
    %c0_i32_0 = arith.constant 0 : i32
    %c0_i32_1 = arith.constant 0 : i32
    return %arg0, %c0_i32, %c0_i32_0 : i32, i32, i32
  }
}

</mosaic_0001>

<bundles_post_ra>
// kernel: block_forward.1
= control target key start
LH: loop header
LB: loop body
LE: loop exit
PB: predicated region body
PF: predicated region fallthrough
CT: control target
= control target key end

     0   :  { %s2946_s0 = inlined_call_operand.vmem [shape: f32[2,8,32], index: 0, kind: input, shape index: {}]   ;;  %s2947_s1 = inlined_call_operand.vmem [shape: f32[1,32], index: 1, kind: input, shape index: {}]   ;;  %s2948_s2 = inlined_call_operand.vmem [shape: f32[1,32], index: 2, kind: input, shape index: {}]   ;;  %s2949_s3 = inlined_call_operand.vmem [shape: f32[32,96], index: 3, kind: input, shape index: {}]   ;;  %s2950_s4 = inlined_call_operand.vmem [shape: f32[1,96], index: 4, kind: input, shape index: {}]   ;;  %s2951_s5 = inlined_call_operand.vmem [shape: f32[32,32], index: 5, kind: input, shape index: {}]   ;;  %s2952_s6 = inlined_call_operand.vmem [shape: f32[1,32], index: 6, kind: input, shape index: {}]   ;;  %s2953_s7 = inlined_call_operand.vmem [shape: f32[1,32], index: 7, kind: input, shape index: {}]   ;;  %s2954_s8 = inlined_call_operand.vmem [shape: f32[1,32], index: 8, kind: input, shape index: {}]   ;;  %s2955_s9 = inlined_call_operand.vmem [shape: f32[32,128], index: 9, kind: input, shape index: {}]   ;;  %s2956_s10 = inlined_call_operand.vmem [shape: f32[1,128], index: 10, kind: input, shape index: {}]   ;;  %s2957_s11 = inlined_call_operand.vmem [shape: f32[128,32], index: 11, kind: input, shape index: {}]   ;;  %s2958_s12 = inlined_call_operand.vmem [shape: f32[1,32], index: 12, kind: input, shape index: {}]   ;;  %s2959_s13 = inlined_call_operand.hbm [shape: f32[2,8,32], index: 13, kind: output, shape index: {}]  }
   0x1   :  { %2960 = sst [smem:[#allocation5_spill]] %s2946_s0 }
   0x2   :  { %2961 = sst [smem:[#allocation6_spill]] %s2947_s1 }
   0x3   :  { %2962 = sst [smem:[#allocation7_spill]] %s2948_s2 }
   0x4   :  { %18 = vsyncpa [#allocation3], 0 }
   0x5   :  { %20 = vsyncpa [#allocation3 + $0x1], 0  ;;  %s2622_s25 = smov 0   ;;  %s2624_s26 = smov 0  }
   0x6   :  { %s2626_s27 = smov 0   ;;  %s2628_s28 = smov 0  }
   0x7 LB: > { %s2643_s29 = sadd.s32 4294967295, %s2536_s28   ;;  %s2165_s30 = sadd.s32 4294967294, %s2536_s28   ;;  %s2536_s28 = sphi %s2628_s28, %s2971_s28   ;;  %s2532_s27 = sphi %s2626_s27, %s2970_s27   ;;  %s2528_s26 = sphi %s2624_s26, %s2969_s26   ;;  %s2524_s25 = sphi %s2622_s25, %s2968_s25  }
   0x8   : > { %s2647_s14 = sadd.s32 1, %s2536_s28   ;;  %s311_s15 = sadd.s32 1, %s2532_s27 }
   0x9   : > { %s308_s16 = ssub.s32 %s2536_s28, %s2647_s14  ;;  %p321_p0 = scmp.ne.s32.totalorder %s2532_s27, %s2528_s26 }
   0xa   : > { %p309_p1 = scmp.eq.s32.totalorder %s308_s16, 0  ;;  %p322_p2 = scmp.eq.s32.totalorder %s2643_s29, 1 }
   0xb   : > { %p327_p3 = scmp.ne.s32.totalorder %s2528_s26, %s2524_s25  ;;  %p328_p4 = scmp.eq.s32.totalorder %s2165_s30, 1 }
   0xc   : > { %s2658_s17 = scalar_select %p309_p1, %s2532_s27, %s311_s15  }
   0xd   : > { %p2660_p5 = por %p322_p2, %p321_p0  ;;  %p2664_p6 = por %p328_p4, %p327_p3 }
   0xe   : > { %p2168_p7 = scmp.ge.s32.totalorder %s2536_s28, 1  ;;  %p389_p8 = scmp.lt.s32.totalorder %s2536_s28, 3 }
  0x10   : > { %p390_p9 = pnand %p2168_p7, %p389_p8 }
  0x11   : > { %p432_p10 = scmp.lt.s32.totalorder (!%p390_p9), %s2643_s29, 1  ;;  %vm444_vm0 = vcmask (!%p390_p9), 261120   ;;  %s2965_s0 = sld [smem:[#allocation5_spill]] (!%p390_p9)  ;;  %v473_v7 = vld [vmem:[%s2949_s3] sm:$0xff] (!%p390_p9)  ;;  %v474_v8 = vld [vmem:[%s2949_s3 + $0x8] sm:$0xff] (!%p390_p9)  ;;  %v475_v9 = vld [vmem:[%s2949_s3 + $0x10] sm:$0xff] (!%p390_p9)  ;;  %v437_v39 = vlaneseq (!%p390_p9) }
  0x12   : > { %393 = sbr.rel (%p390_p9) target bundleno = 2981 (0xba5), region = 72  ;;  %v2538_v10 = vmov (!%p390_p9), 0.0|0.0   ;;  %v2357_v11 = vpack.c.bf16 (!%p390_p9), %v474_v8, %v473_v7  ;;  %v476_v12 = vld [vmem:[%s2949_s3 + $0x18] sm:$0xff] (!%p390_p9)  ;;  %vm2539_vm1 = vmmov (!%p390_p9), 0   ;;  %v2540_v13 = vmov (!%p390_p9), 0.0   ;;  %s2966_s1 = sld [smem:[#allocation6_spill]] (!%p390_p9) }
  0x13   : > { %2356 = vmatprep.subr.bf16.mxu0 (!%p390_p9), %v2538_v10  ;;  %2256 = vmatprep.mubr.msk.f32.mxu0 (!%p390_p9), %vm2539_vm1, %v2540_v13  ;;  %v2360_v14 = vpack.c.bf16 (!%p390_p9), %v476_v12, %v475_v9  ;;  %s2967_s2 = sld [smem:[#allocation7_spill]] (!%p390_p9)  ;;  %v2173_v24 = vld [vmem:[%s2950_s4] ss:$0 sm:$0xff] (!%p390_p9)  ;;  %s2541_s23 = smov (!%p390_p9), 104   ;;  %vm704_vm2 = vcmask (!%p390_p9), 64512   ;;  %v2744_v40 = vshrl.u32 (!%p390_p9), %v437_v39, 7 }
  0x14   : > { %2269 = vmatprep.subr.mxu1 (!%p390_p9), %v2540_v13  ;;  %2271 = vmatprep.mubr.msk.f32.mxu1 (!%p390_p9), %vm2539_vm1, %v2540_v13  ;;  %s2543_s30 = smov (!%p390_p9), 112   ;;  %s2544_s15 = smov (!%p390_p9), 96   ;;  %v440_v41 = vand.u32 (!%p390_p9), 127, %v437_v39  ;;  %vm1768_vm4 = vcmask (!%p390_p9), 130048   ;;  %vm1770_vm5 = vcmask (!%p390_p9), 195584  }
  0x15   : > { %2358 = vmatpush3.bf16.msra.mxu0 (!%p390_p9), %v2357_v11  ;;  %s2545_s16 = smov (!%p390_p9), 64   ;;  %s2550_s22 = smov (!%p390_p9), 24  }
  0x16   : > { %2359 = vmatprep.subr.bf16.mxu0 (!%p390_p9), %v2538_v10  ;;  %vm441_vm3 = vcmp.ge.s32.totalorder (!%p390_p9), %v2744_v40, %v440_v41 }
  0x18   : > { %v2171_v19 = vld [vmem:[%s2966_s1] ss:$0 sm:$0xff] (!%p390_p9) }
  0x19   : > { %s433_s20 = scalar_select %p432_p10, %s2643_s29, 1  ;;  %2361 = vmatpush3.bf16.msra.mxu0 %v2360_v14  ;;  %v2172_v21 = vld [vmem:[%s2967_s2] ss:$0 sm:$0xff] }
  0x1a   : > { %2259 = vmatprep.subr.mxu0 %v2540_v13 }
  0x1b   : > { %s2170_s21 = sshll.u32 %s433_s20, 3  ;;  %s2548_s20 = smov 16  }
  0x1c   : > { %s435_s24 = scalar_lea.vmem %s2965_s0, %s2170_s21  ;;  %s2549_s21 = smov 8  }
  0x1d   : > { %v2675_v0 = vld [vmem:[%s435_s24] sm:$0xff]  ;;  %s2542_s24 = smov 120  }
  0x1e   : > { %v445_v1 = vsel %vm444_vm0, %v2675_v0, 0.0 }
  0x1f   : > { %446 = vadd.xlane.f32.xlu0 %v445_v1 }
  0xac   : > { %v447_v2 = vpop.xlane.xlu0 %446 }
  0xad   : > { %v449_v3 = vmul.f32 0.03125, %v447_v2 }
  0xaf   : > { %v450_v4 = vsub.f32 %v2675_v0, %v449_v3 }
  0xb1   : > { %v451_v5 = vmul.f32 %v450_v4, %v450_v4 }
  0xb3   : > { %v452_v6 = vsel %vm444_vm0, %v451_v5, 0.0 }
  0xb4   : > { %453 = vadd.xlane.f32.xlu0 %v452_v6 }
 0x141   : > { %v454_v15 = vpop.xlane.xlu0 %453 }
 0x142   : > { %v455_v16 = vmul.f32 0.03125, %v454_v15 }
 0x144   : > { %v456_v17 = vadd.f32 1e-05, %v455_v16 }
 0x146   : > { %2450 = vrsqrt.f32 %v456_v17 }
 0x150   : > { %v2451_v18 = vpop.eup %2450 }
 0x151   : > { %v458_v20 = vmul.f32 %v2451_v18, %v450_v4 }
 0x153   : > { %v465_v22 = vmul.f32 %v2171_v19, %v458_v20 }
 0x155   : > { %v472_v23 = vadd.f32 %v2172_v21, %v465_v22 }
 0x157   : > { %2257 = vmatmul.mubr.msk.f32.vlgmr.msra.gmra.mrb[0].mxu0 %vm444_vm0, %v472_v23 }
 0x158   : > { %2261 = vmatprep.mubr.msk.f32.mxu0 %vm2539_vm1, %v2540_v13 }
 0x22a   : > { %v553_v25 = vpop.f32.mrb[0].mxu0 }
 0x22b   : > { %v2713_v26 = vadd.f32 %v2173_v24, %v553_v25  ;;  %v2258_v27 = vpop.f32.mrb[1].mxu0 }
 0x22d   : > { %562 = vrot.lane.b32.xlu0 %v2713_v26, %s2541_s23  ;;  %558 = vrot.lane.b32.xlu1 %v2713_v26, %s2542_s24  ;;  %s429_s23 = sand.u32 1, %s2528_s26  }
 0x22e   : > { %s2169_s24 = sshll.u32 %s429_s23, 3 }
 0x231   : > { %560 = vrot.lane.b32.xlu1 %v2713_v26, %s2543_s30  ;;  %s2093_s30 = scalar_lea.sflag [#allocation3], %s429_s23 }
 0x235   : > { %564 = vrot.lane.b32.xlu1 %v2713_v26, %s2544_s15 }
 0x29f   : > { %v2719_v28 = vpop.permute.xlu1 %558  ;;  %v563_v30 = vpop.permute.xlu0 %562 }
 0x2a0   : > { %566 = vrot.lane.b32.xlu1 %v2719_v28, %s2544_s15 }
 0x2a3   : > { %v2722_v29 = vpop.permute.xlu1 %560 }
 0x2a4   : > { %568 = vrot.lane.b32.xlu1 %v2722_v29, %s2544_s15 }
 0x2a7   : > { %v565_v31 = vpop.permute.xlu1 %564 }
 0x2a8   : > { %570 = vrot.lane.b32.xlu1 %v563_v30, %s2544_s15 }
 0x2d1   : > { %576 = vxpose.xlu1.b32.start.end [1/1] (short) (narrow) %v565_v31, 8 }
 0x312   : > { %v567_v32 = vpop.permute.xlu1 %566 }
 0x313   : > { %608 = vxpose.xlu0.b32.start.end [1/1] (short) (narrow) %v567_v32, 8 }
 0x316   : > { %v569_v33 = vpop.permute.xlu1 %568 }
 0x317   : > { %640 = vxpose.xlu0.b32.start.end [1/1] (short) (narrow) %v569_v33, 8 }
 0x31a   : > { %v571_v34 = vpop.permute.xlu1 %570 }
 0x31b   : > { %672 = vxpose.xlu0.b32.start.end [1/1] (short) (narrow) %v571_v34, 8 }
 0x351   : > { %v592_v35 = vpop.trf.xlu1 }
 0x352   : > { %2260 = vmatpush3.msra.mxu0 %v592_v35 }
 0x353   : > { %2262 = vmatmul.mubr.msk.f32.vlgmr.msra.gmra.mrb[2].mxu0 %vm704_vm2, %v2713_v26  ;;  %2264 = vmatprep.subr.mxu0 %v2540_v13 }
 0x354   : > { %2266 = vmatprep.mubr.msk.f32.mxu0 %vm2539_vm1, %v2540_v13 }
 0x393   : > { %v624_v36 = vpop.trf.xlu0 }
 0x394   : > { %2265 = vmatpush3.msra.mxu0 %v624_v36 }
 0x395   : > { %2267 = vmatmul.mubr.msk.f32.vlgmr.msra.gmra.mrb[4].mxu0 %vm704_vm2, %v2719_v28  ;;  %2274 = vmatprep.subr.mxu0 %v2540_v13 }
 0x396   : > { %2276 = vmatprep.mubr.msk.f32.mxu0 %vm2539_vm1, %v2540_v13 }
 0x397   : > { %v656_v37 = vpop.trf.xlu0 }
 0x398   : > { %2270 = vmatpush3.msra.mxu1 %v656_v37 }
 0x399   : > { %2272 = vmatmul.mubr.msk.f32.vlgmr.msra.gmra.mrb[0].mxu1 %vm704_vm2, %v2722_v29  ;;  %2279 = vmatprep.subr.mxu1 %v2540_v13 }
 0x39a   : > { %2281 = vmatprep.mubr.msk.f32.mxu1 %vm2539_vm1, %v2540_v13 }
 0x39b   : > { %v688_v38 = vpop.trf.xlu0 }
 0x39c   : > { %2275 = vmatpush3.msra.mxu0 %v688_v38 }
 0x39d   : > { %2277 = vmatmul.mubr.msk.f32.vlgmr.msra.gmra.mrb[6].mxu0 %vm704_vm2, %v563_v30  ;;  %2284 = vmatprep.subr.mxu0 %v2540_v13 }
 0x39e   : > { %2286 = vmatprep.mubr.msk.f32.mxu0 %vm2539_vm1, %v2540_v13 }
 0x426   : > { %v773_v42 = vpop.f32.mrb[2].mxu0 }
 0x427   : > { %v993_v43 = vmul.f32 0.35355338, %v773_v42  ;;  %v2263_v44 = vpop.f32.mrb[3].mxu0 }
 0x429   : > { %v999_v45 = vsel %vm441_vm3, %v993_v43, -1e+30 }
 0x42a   : > { %v1003_v46 = vsel %vm704_vm2, %v999_v45, -inf }
 0x42b   : > { %1004 = vmax.xlane.f32.xlu1 %v1003_v46 }
 0x468   : > { %v845_v47 = vpop.f32.mrb[4].mxu0 }
 0x469   : > { %v994_v48 = vmul.f32 0.35355338, %v845_v47  ;;  %v2268_v49 = vpop.f32.mrb[5].mxu0 }
 0x46b   : > { %v1000_v50 = vsel %vm441_vm3, %v994_v48, -1e+30 }
 0x46c   : > { %v917_v51 = vpop.f32.mrb[0].mxu1  ;;  %v1006_v52 = vsel %vm704_vm2, %v1000_v50, -inf }
 0x46d   : > { %v995_v53 = vmul.f32 0.35355338, %v917_v51  ;;  %v2273_v54 = vpop.f32.mrb[1].mxu1  ;;  %1007 = vmax.xlane.f32.xlu0 %v1006_v52  ;;  %v1773_v51 = vld [vmem:[%s2951_s5 + $0x8] sm:$0xff] }
 0x46e   : > { %v2546_v54 = vmov 1983009808  }
 0x46f   : > { %v1001_v55 = vsel %vm441_vm3, %v995_v53, -1e+30 }
 0x470   : > { %v989_v56 = vpop.f32.mrb[6].mxu0  ;;  %v1009_v57 = vsel %vm704_vm2, %v1001_v55, -inf }
 0x471   : > { %v996_v58 = vmul.f32 0.35355338, %v989_v56  ;;  %1010 = vmax.xlane.f32.xlu1 %v1009_v57  ;;  %v2278_v59 = vpop.f32.mrb[7].mxu0  ;;  %v2547_v56 = vmov 1934713408  }
 0x472   : > { %v1654_v57 = vunpack.c.l.s4 %v2547_v56 }
 0x473   : > { %v1002_v60 = vsel %vm441_vm3, %v996_v58, -1e+30 }
 0x474   : > { %v1012_v61 = vsel %vm704_vm2, %v1002_v60, -inf }
 0x475   : > { %1013 = vmax.xlane.f32.xlu1 %v1012_v61  ;;  %v1655_v61 = vunpack.c.0.s8 %v1654_v57 }
 0x483   : > { %1049 = vrot.lane.b32.xlu0 %v2719_v28, %s2545_s16 }
 0x486   : > { %1047 = vrot.lane.b32.xlu1 %v2713_v26, %s2545_s16 }
 0x48a   : > { %1051 = vrot.lane.b32.xlu1 %v2722_v29, %s2545_s16 }
 0x48e   : > { %1053 = vrot.lane.b32.xlu1 %v563_v30, %s2545_s16  ;;  %s2197_s16 = sshll.u32 %s2643_s29, 7 }
 0x48f   : > { %s2903_s1 = scalar_lea.hbm %s2959_s13, %s2197_s16 }
 0x4b8   : > { %v1005_v62 = vpop.xlane.xlu1 %1004 }
 0x4b9   : > { %v1015_v63 = vsub.f32 %v999_v45, %v1005_v62 }
 0x4bb   : > { %v1019_v1 = vmul.f32 1.442695, %v1015_v63 }
 0x4bd   : > { %2452 = vpow2.f32 %v1019_v1 }
 0x4c7   : > { %v2453_v2 = vpop.eup %2452 }
 0x4c8   : > { %v1027_v3 = vsel %vm704_vm2, %v2453_v2, 0.0 }
 0x4c9   : > { %1028 = vadd.xlane.f32.xlu0 %v1027_v3 }
 0x4fa   : > { %v1008_v4 = vpop.xlane.xlu0 %1007 }
 0x4fb   : > { %v1016_v5 = vsub.f32 %v1000_v50, %v1008_v4  ;;  %v1772_v50 = vld [vmem:[%s2951_s5] sm:$0xff] }
 0x4fc   : > { %v2363_v52 = vpack.c.bf16 %v1773_v51, %v1772_v50 }
 0x4fd   : > { %v1021_v6 = vmul.f32 1.442695, %v1016_v5  ;;  %v1658_v5 = vsub.s32 %v1655_v61, %v2744_v40  ;;  %v1888_v61 = vld [vmem:[%s2955_s9 + $0x10] sm:$0xff] }
 0x4fe   : > { %v1011_v7 = vpop.xlane.xlu1 %1010  ;;  %v1050_v22 = vpop.permute.xlu0 %1049 }
 0x4ff   : > { %2454 = vpow2.f32 %v1021_v6  ;;  %v1017_v8 = vsub.f32 %v1001_v55, %v1011_v7  ;;  %v1622_v55 = vunpack.c.l.s4 %v2546_v54 }
 0x501   : > { %v1023_v9 = vmul.f32 1.442695, %v1017_v8  ;;  %v1623_v59 = vunpack.c.0.s8 %v1622_v55 }
 0x502   : > { %v1014_v11 = vpop.xlane.xlu1 %1013 }
 0x503   : > { %2456 = vpow2.f32 %v1023_v9  ;;  %v1018_v12 = vsub.f32 %v1002_v60, %v1014_v11  ;;  %v1626_v62 = vsub.s32 %v1623_v59, %v2744_v40  ;;  %v1886_v59 = vld [vmem:[%s2955_s9] sm:$0xff] }
 0x505   : > { %v1025_v14 = vmul.f32 1.442695, %v1018_v12 }
 0x506   : > { %v1048_v21 = vpop.permute.xlu1 %1047 }
 0x507   : > { %2458 = vpow2.f32 %v1025_v14 }
 0x509   : > { %v2455_v15 = vpop.eup %2454 }
 0x50a   : > { %v1030_v16 = vsel %vm704_vm2, %v2455_v15, 0.0  ;;  %v1052_v23 = vpop.permute.xlu1 %1051 }
 0x50b   : > { %1031 = vadd.xlane.f32.xlu1 %v1030_v16  ;;  %v1774_v16 = vld [vmem:[%s2951_s5 + $0x10] sm:$0xff] }
 0x50d   : > { %v2457_v17 = vpop.eup %2456 }
 0x50e   : > { %v1033_v18 = vsel %vm704_vm2, %v2457_v17, 0.0  ;;  %v1054_v24 = vpop.permute.xlu1 %1053 }
 0x50f   : > { %1034 = vadd.xlane.f32.xlu0 %v1033_v18 }
 0x511   : > { %v2459_v19 = vpop.eup %2458 }
 0x512   : > { %v1036_v20 = vsel %vm704_vm2, %v2459_v19, 0.0 }
 0x513   : > { %1037 = vadd.xlane.f32.xlu0 %v1036_v20 }
 0x53e   : > { %1059 = vxpose.xlu1.b32.start.end [1/1] (short) (narrow) %v1048_v21, 8 }
 0x540   : > { %1091 = vxpose.xlu0.b32.start.end [1/1] (short) (narrow) %v1050_v22, 8 }
 0x544   : > { %1123 = vxpose.xlu0.b32.start.end [1/1] (short) (narrow) %v1052_v23, 8 }
 0x548   : > { %1155 = vxpose.xlu0.b32.start.end [1/1] (short) (narrow) %v1054_v24, 8 }
 0x556   : > { %v1029_v25 = vpop.xlane.xlu0 %1028 }
 0x557   : > { %2460 = vrcp.f32 %v1029_v25 }
 0x561   : > { %v2461_v26 = vpop.eup %2460 }
 0x562   : > { %v1043_v27 = vmul.f32 %v2461_v26, %v2453_v2 }
 0x564   : > { %2280 = vmatpush3.xpose.msk.msra.mxu1 %vm704_vm2, %v1043_v27 }
 0x565   : > { %2289 = vmatprep.subr.mxu1 %v2540_v13 }
 0x598   : > { %v1032_v28 = vpop.xlane.xlu1 %1031 }
 0x599   : > { %2462 = vrcp.f32 %v1032_v28 }
 0x59c   : > { %v1035_v31 = vpop.xlane.xlu0 %1034 }
 0x59d   : > { %2464 = vrcp.f32 %v1035_v31 }
 0x5a0   : > { %v1038_v32 = vpop.xlane.xlu0 %1037 }
 0x5a1   : > { %2466 = vrcp.f32 %v1038_v32 }
 0x5a3   : > { %v2463_v29 = vpop.eup %2462 }
 0x5a4   : > { %v1044_v30 = vmul.f32 %v2463_v29, %v2455_v15 }
 0x5a6   : > { %2285 = vmatpush3.xpose.msk.msra.mxu0 %vm704_vm2, %v1044_v30 }
 0x5a7   : > { %2294 = vmatprep.subr.mxu0 %v2540_v13  ;;  %v2465_v33 = vpop.eup %2464 }
 0x5a8   : > { %v1045_v35 = vmul.f32 %v2465_v33, %v2457_v17  ;;  %v1775_v17 = vld [vmem:[%s2951_s5 + $0x18] sm:$0xff] }
 0x5a9   : > { %v2366_v21 = vpack.c.bf16 %v1775_v17, %v1774_v16  ;;  %v2000_v16 = vld [vmem:[%s2957_s11 + $0x18] sm:$0xff] }
 0x5ab   : > { %v2467_v34 = vpop.eup %2466 }
 0x5ac   : > { %v1046_v37 = vmul.f32 %v2467_v34, %v2459_v19 }
 0x5be   : > { %v1075_v36 = vpop.trf.xlu1 }
 0x5bf   : > { %2282 = vmatmul.mubr.msk.f32.vlgmr.msra.gmra.mrb[2].mxu1 %vm704_vm2, %v1075_v36 }
 0x5c0   : > { %2290 = vmatpush3.xpose.msk.msra.mxu1 %vm704_vm2, %v1045_v35  ;;  %v1107_v38 = vpop.trf.xlu0  ;;  %2291 = vmatprep.mubr.msk.f32.mxu1 %vm2539_vm1, %v2540_v13 }
 0x5c1   : > { %2287 = vmatmul.mubr.msk.f32.vlgmr.msra.gmra.mrb[8].mxu0 %vm704_vm2, %v1107_v38  ;;  %2374 = vmatprep.subr.bf16.mxu1 %v2538_v10 }
 0x5c2   : > { %2295 = vmatpush3.xpose.msk.msra.mxu0 %vm704_vm2, %v1046_v37  ;;  %2296 = vmatprep.mubr.msk.f32.mxu0 %vm2539_vm1, %v2540_v13 }
 0x5c3   : > { %2362 = vmatprep.subr.bf16.mxu0 %v2538_v10 }
 0x5c4   : > { %v1139_v39 = vpop.trf.xlu0 }
 0x5c5   : > { %2292 = vmatmul.mubr.msk.f32.vlgmr.msra.gmra.mrb[4].mxu1 %vm704_vm2, %v1139_v39 }
 0x5c6   : > { %2353 = vmatprep.mubr.msk.f32.mxu1 %vm2539_vm1, %v2540_v13 }
 0x5c8   : > { %v1171_v41 = vpop.trf.xlu0 }
 0x5c9   : > { %2297 = vmatmul.mubr.msk.f32.vlgmr.msra.gmra.mrb[10].mxu0 %vm704_vm2, %v1171_v41 }
 0x5ca   : > { %2307 = vmatprep.mubr.msk.f32.mxu0 %vm2539_vm1, %v2540_v13  ;;  %2364 = vmatpush3.bf16.msra.mxu0 %v2363_v52 }
 0x5cb   : > { %2365 = vmatprep.subr.bf16.mxu0 %v2538_v10 }
 0x5ce   : > { %2367 = vmatpush3.bf16.msra.mxu0 %v2366_v21  ;;  %v2004_v21 = vld [vmem:[%s2957_s11 + $0x38] sm:$0xff] }
 0x5cf   : > { %2368 = vmatprep.subr.bf16.mxu0 %v2538_v10 }
 0x692   : > { %v1259_v42 = vpop.f32.mrb[2].mxu1 }
 0x693   : > { %1491 = vxpose.xlu1.b32.start.end [1/1] (short) (narrow) %v1259_v42, 8  ;;  %v2283_v43 = vpop.f32.mrb[3].mxu1 }
 0x694   : > { %v1335_v44 = vpop.f32.mrb[8].mxu0 }
 0x695   : > { %v2288_v45 = vpop.f32.mrb[9].mxu0  ;;  %1523 = vxpose.xlu0.b32.start.end [1/1] (short) (narrow) %v1335_v44, 8 }
 0x698   : > { %v1411_v46 = vpop.f32.mrb[4].mxu1 }
 0x699   : > { %v2293_v47 = vpop.f32.mrb[5].mxu1  ;;  %1555 = vxpose.xlu1.b32.start.end [1/1] (short) (narrow) %v1411_v46, 8 }
 0x69c   : > { %v1487_v48 = vpop.f32.mrb[10].mxu0 }
 0x69d   : > { %1587 = vxpose.xlu0.b32.start.end [1/1] (short) (narrow) %v1487_v48, 8  ;;  %v2298_v49 = vpop.f32.mrb[11].mxu0 }
 0x69e   : > { %v2189_v49 = vld [vmem:[%s2952_s6] ss:$0 sm:$0xff] }
 0x713   : > { %v1507_v53 = vpop.trf.xlu1 }
 0x715   : > { %v1539_v58 = vpop.trf.xlu0 }
 0x719   : > { %v1571_v60 = vpop.trf.xlu1 }
 0x71a   : > { %v1619_v63 = vcombine.low %v1507_v53, %v1571_v60  ;;  %v1620_v1 = vcombine.high %v1507_v53, %v1571_v60 }
 0x71c   : > { %v1627_v6 = vrot.slane %v1619_v63, %v1626_v62  ;;  %v1634_v7 = vrot.slane %v1620_v1, %v1626_v62 }
 0x71d   : > { %v1603_v2 = vpop.trf.xlu0 }
 0x71e   : > { %v1635_v3 = vcombine.low %v1539_v58, %v1603_v2  ;;  %v1636_v4 = vcombine.high %v1539_v58, %v1603_v2 }
 0x720   : > { %v1643_v8 = vrot.slane %v1635_v3, %v1626_v62  ;;  %v1650_v9 = vrot.slane %v1636_v4, %v1626_v62 }
 0x722   : > { %v1651_v11 = vcombine.low %v1627_v6, %v1643_v8  ;;  %v1652_v12 = vcombine.high %v1627_v6, %v1643_v8  ;;  %v1667_v14 = vcombine.low %v1634_v7, %v1650_v9  ;;  %v1668_v15 = vcombine.high %v1634_v7, %v1650_v9  ;;  %v2192_v7 = vld [vmem:[%s2954_s8] ss:$0 sm:$0xff] }
 0x724   : > { %v1659_v18 = vrot.slane %v1651_v11, %v1658_v5  ;;  %v1666_v19 = vrot.slane %v1652_v12, %v1658_v5  ;;  %v1675_v20 = vrot.slane %v1667_v14, %v1658_v5  ;;  %v1682_v40 = vrot.slane %v1668_v15, %v1658_v5  ;;  %v1997_v11 = vld [vmem:[%s2957_s11] sm:$0xff]  ;;  %v1998_v12 = vld [vmem:[%s2957_s11 + $0x8] sm:$0xff]  ;;  %v1999_v15 = vld [vmem:[%s2957_s11 + $0x10] sm:$0xff] }
 0x725   : > { %v2375_v14 = vpack.c.bf16 %v1998_v12, %v1997_v11  ;;  %v2378_v17 = vpack.c.bf16 %v2000_v16, %v1999_v15 }
 0x726   : > { %v1687_v22 = vcombine.low %v1659_v18, %v1666_v19  ;;  %v2187_v23 = vcombine.high %v1659_v18, %v1666_v19  ;;  %v1703_v24 = vcombine.low %v1675_v20, %v1682_v40  ;;  %v2188_v25 = vcombine.high %v1675_v20, %v1682_v40  ;;  %v2001_v18 = vld [vmem:[%s2957_s11 + $0x20] sm:$0xff]  ;;  %v2002_v19 = vld [vmem:[%s2957_s11 + $0x28] sm:$0xff]  ;;  %v2003_v40 = vld [vmem:[%s2957_s11 + $0x30] sm:$0xff] }
 0x727   : > { %2376 = vmatpush3.bf16.msra.mxu1 %v2375_v14  ;;  %v2381_v20 = vpack.c.bf16 %v2002_v19, %v2001_v18 }
 0x728   : > { %v1694_v26 = vrot.slane %v1687_v22, %v1626_v62  ;;  %v1702_v27 = vrot.slane %v2187_v23, %v1626_v62  ;;  %v1710_v28 = vrot.slane %v1703_v24, %v1626_v62  ;;  %v1718_v29 = vrot.slane %v2188_v25, %v1626_v62  ;;  %v1889_v62 = vld [vmem:[%s2955_s9 + $0x18] sm:$0xff]  ;;  %2377 = vmatprep.subr.bf16.mxu1 %v2538_v10  ;;  %v2005_v23 = vld [vmem:[%s2957_s11 + $0x40] sm:$0xff]  ;;  %v2006_v24 = vld [vmem:[%s2957_s11 + $0x48] sm:$0xff] }
 0x729   : > { %v2372_v63 = vpack.c.bf16 %v1889_v62, %v1888_v61  ;;  %v2384_v22 = vpack.c.bf16 %v2004_v21, %v2003_v40  ;;  %v2387_v25 = vpack.c.bf16 %v2006_v24, %v2005_v23 }
 0x72a   : > { %v1720_v30 = vcombine.high %v1694_v26, %v1702_v27  ;;  %v1736_v31 = vcombine.high %v1710_v28, %v1718_v29  ;;  %v1719_v32 = vcombine.low %v1694_v26, %v1702_v27  ;;  %v1735_v33 = vcombine.low %v1710_v28, %v1718_v29  ;;  %v2007_v26 = vld [vmem:[%s2957_s11 + $0x50] sm:$0xff]  ;;  %v2008_v27 = vld [vmem:[%s2957_s11 + $0x58] sm:$0xff]  ;;  %v2009_v29 = vld [vmem:[%s2957_s11 + $0x60] sm:$0xff] }
 0x72b   : > { %2379 = vmatpush3.bf16.msra.mxu1 %v2378_v17  ;;  %v2390_v28 = vpack.c.bf16 %v2008_v27, %v2007_v26 }
 0x72c   : > { %v1734_v34 = vrot.slane %v1720_v30, %v1658_v5  ;;  %v1750_v35 = vrot.slane %v1736_v31, %v1658_v5  ;;  %v1727_v36 = vrot.slane %v1719_v32, %v1658_v5  ;;  %v1743_v37 = vrot.slane %v1735_v33, %v1658_v5  ;;  %v2191_v5 = vld [vmem:[%s2953_s7] ss:$0 sm:$0xff]  ;;  %2380 = vmatprep.subr.bf16.mxu1 %v2538_v10  ;;  %v2010_v30 = vld [vmem:[%s2957_s11 + $0x68] sm:$0xff]  ;;  %v2011_v32 = vld [vmem:[%s2957_s11 + $0x70] sm:$0xff] }
 0x72d   : > { %v2393_v31 = vpack.c.bf16 %v2010_v30, %v2009_v29  ;;  %v2012_v33 = vld [vmem:[%s2957_s11 + $0x78] sm:$0xff] }
 0x72e   : > { %v1753_v38 = vcombine.low %v1734_v34, %v1750_v35  ;;  %v1752_v39 = vcombine.high %v1727_v36, %v1743_v37  ;;  %v1751_v41 = vcombine.low %v1727_v36, %v1743_v37  ;;  %v1754_v42 = vcombine.high %v1734_v34, %v1750_v35  ;;  %v2193_v35 = vld [vmem:[%s2956_s10] ss:$0 sm:$0xff] }
 0x72f   : > { %2382 = vmatpush3.bf16.msra.mxu1 %v2381_v20  ;;  %v2396_v34 = vpack.c.bf16 %v2012_v33, %v2011_v32 }
 0x730   : > { %1760 = vrot.lane.b32.xlu0 %v1753_v38, %s2548_s20  ;;  %1756 = vrot.lane.b32.xlu1 %v1752_v39, %s2549_s21  ;;  %s431_s20 = scalar_lea.vmem [#allocation2], %s2169_s24  ;;  %s2551_s24 = smov [#allocation2]  }
 0x731   : > { %2383 = vmatprep.subr.bf16.mxu1 %v2538_v10  ;;  %s2106_s21 = sshll.u32 %s431_s20, 4  ;;  %s2478_s15 = sshll.u32 %s2551_s24, 4  ;;  %s2905_s21 = int_to_ptr.vmem [resolvable:$true] %s2106_s21  ;;  %s2479_s15 = int_to_ptr.vmem [resolvable:$false] %s2478_s15 }
 0x732   : > { %s2474_s29 = scalar_lea.vmem %s2905_s21, 128  ;;  %s2480_s2 = scalar_lea.vmem %s2479_s15, 256 }
 0x733   : > { %2385 = vmatpush3.bf16.msra.mxu1 %v2384_v22  ;;  %p2475_p11 = scmp.ne.s32.totalorder %s2905_s21, %s2474_s29  ;;  %p2481_p0 = scmp.lt.s32.totalorder %s2905_s21, %s2479_s15 }
 0x734   : > { %1764 = vrot.lane.b32.xlu1 %v1754_v42, %s2550_s22  ;;  %2386 = vmatprep.subr.bf16.mxu1 %v2538_v10  ;;  %p2482_p1 = scmp.lt.s32.totalorder %s2480_s2, %s2474_s29 }
 0x735   : > { %p2476_p12 = pnand %p2475_p11, %p2660_p5 }
 0x736   : > { %p2483_p2 = por %p2482_p1, %p2481_p0 }
 0x737   : > { %2388 = vmatpush3.bf16.msra.mxu1 %v2387_v25  ;;  %p2477_p13 = pneg %p2476_p12 }
 0x738   : > { %2389 = vmatprep.subr.bf16.mxu1 %v2538_v10 }
 0x739   : > { %p2484_p3 = pnand %p2483_p2, %p2477_p13 }
 0x73b   : > { %2391 = vmatpush3.bf16.msra.mxu1 %v2390_v28 }
 0x73c   : > { %2392 = vmatprep.subr.bf16.mxu1 %v2538_v10 }
 0x73f   : > { %2394 = vmatpush3.bf16.msra.mxu1 %v2393_v31 }
 0x740   : > { %2395 = vmatprep.subr.bf16.mxu1 %v2538_v10 }
 0x743   : > { %2397 = vmatpush3.bf16.msra.mxu1 %v2396_v34 }
 0x7a2   : > { %v1757_v43 = vpop.permute.xlu1 %1756  ;;  %v1761_v44 = vpop.permute.xlu0 %1760 }
 0x7a3   : > { %v1767_v45 = vsel %vm704_vm2, %v1751_v41, %v1757_v43 }
 0x7a4   : > { %v1769_v47 = vsel %vm1768_vm4, %v1767_v45, %v1761_v44 }
 0x7a6   : > { %v1765_v46 = vpop.permute.xlu1 %1764 }
 0x7a7   : > { %v1771_v48 = vsel %vm1770_vm5, %v1769_v47, %v1765_v46 }
 0x7a8   : > { %2308 = vmatmul.mubr.msk.f32.vlgmr.msra.gmra.mrb[12].mxu0 %vm444_vm0, %v1771_v48 }
 0x7a9   : > { %2318 = vmatprep.mubr.msk.f32.mxu0 %vm2539_vm1, %v2540_v13 }
 0x87b   : > { %v1852_v50 = vpop.f32.mrb[12].mxu0 }
 0x87c   : > { %v1853_v51 = vadd.f32 %v2189_v49, %v1852_v50  ;;  %v2309_v52 = vpop.f32.mrb[13].mxu0 }
 0x87e   : > { %v2810_v53 = vadd.f32 %v1853_v51, %v2675_v0  ;;  %v1887_v0 = vld [vmem:[%s2955_s9 + $0x8] sm:$0xff] }
 0x87f   : > { %v2369_v60 = vpack.c.bf16 %v1887_v0, %v1886_v59 }
 0x880   : > { %v1859_v54 = vsel %vm444_vm0, %v2810_v53, 0.0 }
 0x881   : > { %1860 = vadd.xlane.f32.xlu1 %v1859_v54  ;;  %2370 = vmatpush3.bf16.msra.mxu0 %v2369_v60 }
 0x882   : > { %2371 = vmatprep.subr.bf16.mxu0 %v2538_v10 }
 0x885   : > { %2373 = vmatpush3.bf16.msra.mxu0 %v2372_v63  ;;  %v2195_v63 = vld [vmem:[%s2958_s12] ss:$0 sm:$0xff] }
 0x90e   : > { %v1861_v55 = vpop.xlane.xlu1 %1860 }
 0x90f   : > { %v1862_v56 = vmul.f32 0.03125, %v1861_v55 }
 0x911   : > { %v1863_v57 = vsub.f32 %v2810_v53, %v1862_v56 }
 0x913   : > { %v1864_v58 = vmul.f32 %v1863_v57, %v1863_v57 }
 0x915   : > { %v1865_v13 = vsel %vm444_vm0, %v1864_v58, 0.0 }
 0x916   : > { %1866 = vadd.xlane.f32.xlu0 %v1865_v13 }
 0x9a3   : > { %v1867_v1 = vpop.xlane.xlu0 %1866 }
 0x9a4   : > { %v1868_v2 = vmul.f32 0.03125, %v1867_v1 }
 0x9a6   : > { %v1869_v3 = vadd.f32 1e-05, %v1868_v2 }
 0x9a8   : > { %2468 = vrsqrt.f32 %v1869_v3 }
 0x9b2   : > { %v2469_v4 = vpop.eup %2468 }
 0x9b3   : > { %v1871_v6 = vmul.f32 %v2469_v4, %v1863_v57 }
 0x9b5   : > { %v1878_v8 = vmul.f32 %v2191_v5, %v1871_v6 }
 0x9b7   : > { %v1885_v9 = vadd.f32 %v2192_v7, %v1878_v8 }
 0x9b9   : > { %2319 = vmatmul.mubr.msk.f32.vlgmr.msra.gmra.mrb[14].mxu0 %vm444_vm0, %v1885_v9 }
 0xa8c   : > { %v1966_v36 = vpop.f32.mrb[14].mxu0 }
 0xa8d   : > { %v1967_v37 = vadd.f32 %v2193_v35, %v1966_v36  ;;  %v2320_v38 = vpop.f32.mrb[15].mxu0 }
 0xa8f   : > { %v1971_v39 = vmul.f32 0.70710677, %v1967_v37  ;;  %v1970_v60 = vmul.f32 0.5, %v1967_v37 }
 0xa91   : > { %v1972_v41 = vand.u32 2147483647, %v1971_v39  ;;  %vm1992_vm6 = vcmp.ge.f32.partialorder %v1971_v39, 0.0 }
 0xa93   : > { %v1973_v10 = vmul.f32 0.3275911, %v1972_v41  ;;  %v1986_v43 = vsub.f32 0.0, %v1972_v41 }
 0xa95   : > { %v1974_v42 = vadd.f32 1.0, %v1973_v10  ;;  %v1987_v45 = vmul.f32 %v1986_v43, %v1972_v41 }
 0xa97   : > { %2470 = vrcp.f32 %v1974_v42  ;;  %v1988_v48 = vmul.f32 1.442695, %v1987_v45 }
 0xa99   : > { %2472 = vpow2.f32 %v1988_v48 }
 0xaa1   : > { %v2471_v44 = vpop.eup %2470 }
 0xaa2   : > { %v1977_v46 = vmul.f32 1.0614054, %v2471_v44 }
 0xaa3   : > { %v2473_v57 = vpop.eup %2472 }
 0xaa4   : > { %v1978_v47 = vadd.f32 -1.4531521, %v1977_v46 }
 0xaa6   : > { %v1979_v49 = vmul.f32 %v2471_v44, %v1978_v47 }
 0xaa8   : > { %v1980_v50 = vadd.f32 1.4214138, %v1979_v49 }
 0xaaa   : > { %v1981_v51 = vmul.f32 %v2471_v44, %v1980_v50 }
 0xaac   : > { %v1982_v52 = vadd.f32 -0.28449672, %v1981_v51 }
 0xaae   : > { %v1983_v54 = vmul.f32 %v2471_v44, %v1982_v52 }
 0xab0   : > { %v1984_v55 = vadd.f32 0.2548296, %v1983_v54 }
 0xab2   : > { %v1985_v56 = vmul.f32 %v2471_v44, %v1984_v55 }
 0xab4   : > { %v1990_v58 = vmul.f32 %v2473_v57, %v1985_v56 }
 0xab6   : > { %v1991_v13 = vsub.f32 1.0, %v1990_v58 }
 0xab8   : > { %v1993_v59 = vsub.f32 0.0, %v1991_v13 }
 0xaba   : > { %v1994_v0 = vsel %vm1992_vm6, %v1991_v13, %v1993_v59 }
 0xabb   : > { %v1995_v61 = vadd.f32 1.0, %v1994_v0 }
 0xabd   : > { %v1996_v62 = vmul.f32 %v1995_v61, %v1970_v60 }
 0xabf   : > { %2354 = vmatmul.mubr.f32.vlgmr.msra.gmra.mrb[6].mxu1 %v1996_v62 }
 0xb92   : > { %v2086_v1 = vpop.f32.mrb[6].mxu1 }
 0xb93   : > { %v2087_v2 = vadd.f32 %v2195_v63, %v2086_v1  ;;  %v2355_v3 = vpop.f32.mrb[7].mxu1 }
 0xb95   : > { %v2090_v4 = vadd.f32 %v2087_v2, %v2810_v53 }
 0xb97   : > { %2091 = vst.msk [vmem:[%s431_s20] sm:$0xff] %vm444_vm0, %v2090_v4 }
 0xb98   : > { %2487 = shalt.err (!%p2484_p3)
}
 0xb99   : > { %s2488_s0 = scalar_lea.hbm %s2903_s1, 128  ;;  %s2492_s20 = scalar_lea.hbm %s2959_s13, 256 }
 0xb9a   : > { %p2489_p4 = scmp.ne.s32.totalorder %s2903_s1, %s2488_s0  ;;  %p2493_p9 = scmp.lt.u32.totalorder %s2903_s1, %s2959_s13 }
 0xb9b   : > { %p2494_p10 = scmp.lt.u32.totalorder %s2492_s20, %s2488_s0  ;;  %p2496_p12 = scmp.lt.u32.totalorder %s2488_s0, %s2903_s1 }
 0xb9c   : > { %p2490_p7 = pnand %p2489_p4, %p2660_p5 }
 0xb9d   : > { %p2495_p11 = por %p2494_p10, %p2493_p9 }
 0xb9e   : > { %p2491_p8 = pneg %p2490_p7 }
 0xb9f   : > { %p2497_p13 = por %p2496_p12, %p2495_p11 }
 0xba1   : > { %p2498_p0 = pnand %p2497_p13, %p2491_p8 }
 0xba3   : > { %2501 = shalt.err (!%p2498_p0)
}
 0xba4   : > { %2398 = dma.vmem_to_hbm [thread:$0]  (%p2660_p5), %s2905_s21, 128, %s2903_s1, %s2093_s30  }
 0xba5 PF: > { %p2404_p1 = scmp.ge.s32.totalorder %s2536_s28, 2  ;;  %s2118_s2 = sand.u32 1, %s2524_s25  }
 0xba6   : > { %s2119_s29 = scalar_lea.sflag [#allocation3], %s2118_s2 }
 0xba7   : > { %p2401_p2 = pnand %p2404_p1, %p2664_p6 }
 0xba9   : > { %2519 = dma.done.wait (!%p2401_p2), %s2119_s29, 128  }
 0xbaa   : > { %2521 = vsyncadd (!%p2401_p2), %s2119_s29, 4294967168  ;;  %p23_p3 = scmp.ge.s32.totalorder %s2647_s14, 4   ;;  %s2968_s25 = smov %s2528_s26 }
 0xbab   : > { %s2969_s26 = smov %s2532_s27  ;;  %s2970_s27 = smov %s2658_s17 }
 0xbac   : > { %s2971_s28 = smov %s2647_s14  ;;  %25 = sbr.rel (!%p23_p3) target bundleno = 7 (0x7), region = 107 }
 0xbb3   :  { %2124 = vsyncpa [#allocation3], 1 }
 0xbb4   :  { %2126 = vsyncpa [#allocation3 + $0x1], 1 }

</bundles_post_ra>
